<compile_context>
chip_gen: v7x
topology: tpu7x:2x2x1
jax: 0.10.0
libtpu: 0.0.40
codegen_flags: <defaults>
</compile_context>

<pallas_src>
import functools

import jax
import jax.numpy as jnp
from jax.experimental import pallas as pl
from jax.experimental.pallas import tpu as pltpu

_NEG_SLOPE = 0.2


def _leaky(x):
    # LeakyReLU(0.2) as a single select (max) on the VPU.
    return jnp.maximum(x, _NEG_SLOPE * x)


# ---------------------------------------------------------------------------
# Per-generation VMEM budgeting.
# ---------------------------------------------------------------------------
@functools.lru_cache(maxsize=1)
def _vmem_config():
    """Returns (pipeline_budget_bytes, scoped_vmem_limit_bytes) for this chip."""
    try:
        phys = int(getattr(pltpu.get_tpu_info(), "vmem_capacity_bytes"))
    except Exception:
        phys = 64 * 1024 * 1024                      # conservative (v7x-class)
    if phys >= 96 * 1024 * 1024:                     # v5e / v6e: 128 MiB VMEM
        return 64 * 1024 * 1024, 96 * 1024 * 1024
    # v7x: 64 MiB physical -> leave headroom for f32 temporaries + scratch.
    return 36 * 1024 * 1024, 48 * 1024 * 1024


def _pick_tile_hw(hw_pad, n, c, itemsize, budget, tile_hw_cap=None):
    """Largest multiple-of-128 divisor of hw_pad (itself a multiple of 128) such
    that the fused kernel stays inside `budget`.

    ~8 block-equivalents are charged per grid step: 3 I/O blocks x 2 pipeline
    buffers + in-kernel temporaries (t in the input dtype, h/attn in f32)."""
    cap = max(128, budget // (8 * c * itemsize))
    cap = min(cap, hw_pad)
    # Keep >= ~8 total grid steps so v7x megacore sharding + double-buffering
    # still have something to overlap (soft cap; skipped for tiny problems).
    if n * hw_pad >= 8 * 128:
        steps_cap = max(128, ((n * hw_pad) // 8) // 128 * 128)
        cap = min(cap, steps_cap)
    if tile_hw_cap is not None:
        cap = min(cap, max(128, (tile_hw_cap // 128) * 128))
    best = 128
    t = 128
    while t <= cap:
        if hw_pad % t == 0:
            best = t
        t += 128
    return best


# ---------------------------------------------------------------------------
# Fused kernel:  CALayer-apply + PALayer 1x1 MLP + residual add (one HBM pass).
# ---------------------------------------------------------------------------
def _fused_ca_pa_kernel(y_ref, x_ref, ca_ref, w1_ref, b1_ref, w2_ref, b2_ref, o_ref):
    # y_ref : (C, T)   conv2 output tile (channels on sublanes, HW on lanes)
    # x_ref : (C, T)   block-input residual tile
    # ca_ref: (C, 1)   per-channel CALayer scale, already in the compute dtype
    # w1_ref: (C8, C)  PALayer conv1 (1x1) weight, already in the compute dtype
    # b1_ref: (C8, 1)  PALayer conv1 bias (f32)
    # w2_ref: (C8, 1)  PALayer conv2 (1x1) weight as a column (f32)
    # b2_ref: (1, 1)   PALayer conv2 bias (f32)
    y = y_ref[...]
    t = y * ca_ref[...]                                   # CALayer: y * ca

    # PALayer conv1x1 (C -> C//8): MXU matmul with f32 accumulation.
    h = jnp.dot(w1_ref[...], t, preferred_element_type=jnp.float32)
    h = _leaky(h + b1_ref[...])                           # (C8, T)

    # PALayer conv1x1 (C//8 -> 1): single output channel -> VPU multiply +
    # sublane (XLU) reduction instead of a width-1 MXU matmul.
    a = jnp.sum(h * w2_ref[...], axis=0, keepdims=True) + b2_ref[...]   # (1, T)
    attn = jax.nn.sigmoid(a).astype(y.dtype)

    # PALayer apply + residual add; lane-dense store in the output dtype.
    o_ref[...] = (t * attn + x_ref[...]).astype(o_ref.dtype)


def _fused_ca_pa_residual(y3, x3, ca, pa_w1, pa_b1, pa_w2, pa_b2, tile_hw, vmem_limit):
    n, c, hw = y3.shape
    c8 = pa_w1.shape[0]
    n_hw = hw // tile_hw

    big = lambda i, j: (i, 0, j)      # (N, C, HW) tiles
    cst = lambda i, j: (0, 0)         # resident (constant-index) weight blocks

    return pl.pallas_call(
        _fused_ca_pa_kernel,
        out_shape=jax.ShapeDtypeStruct((n, c, hw), x3.dtype),
        grid_spec=pltpu.PrefetchScalarGridSpec(
            num_scalar_prefetch=0,
            grid=(n, n_hw),
            in_specs=[
                pl.BlockSpec((None, c, tile_hw), big),               # y (conv2 out)
                pl.BlockSpec((None, c, tile_hw), big),               # x (residual)
                pl.BlockSpec((None, c, 1), lambda i, j: (i, 0, 0)),  # ca scale
                pl.BlockSpec((c8, c), cst),                          # pa w1
                pl.BlockSpec((c8, 1), cst),                          # pa b1
                pl.BlockSpec((c8, 1), cst),                          # pa w2
                pl.BlockSpec((1, 1), cst),                           # pa b2
            ],
            out_specs=pl.BlockSpec((None, c, tile_hw), big),
        ),
        compiler_params=pltpu.CompilerParams(
            # Both grid axes are independent -> v7x can split them over its 2 TCs.
            dimension_semantics=("parallel", "parallel"),
            vmem_limit_bytes=vmem_limit,
        ),
    )(y3, x3, ca, pa_w1, pa_b1, pa_w2, pa_b2)


def _conv2d_nchw(x, w, b):
    # PyTorch-style 'same' conv: OIHW weights, padding = kernel_size // 2.
    pad = w.shape[-1] // 2
    out = jax.lax.conv_general_dilated(
        x, w, window_strides=(1, 1),
        padding=[(pad, pad), (pad, pad)],
        dimension_numbers=("NCHW", "OIHW", "NCHW"))
    if b is not None:
        out = out + b[None, :, None, None]
    return out


@functools.partial(jax.jit, static_argnames=("tile_hw_cap",))
def cp_attention_block_forward(x, params, *, tile_hw_cap=None):
    """CP_Attention_block forward. x: (N, C, H, W). For bias=False configs pass
    zero bias arrays."""
    n, c, h, w = x.shape
    hw = h * w
    c8 = params["pa_w1"].shape[0]

    # res = LeakyReLU(conv1(x)) + x ; y = conv2(res)   (KxK convs on XLA)
    res = _leaky(_conv2d_nchw(x, params["conv1_w"], params["conv1_b"])) + x
    y = _conv2d_nchw(res, params["conv2_w"], params["conv2_b"])

    # CALayer: global average pool + tiny per-batch MLP on plain XLA so the
    # reduction can fuse into conv2's output fusion (no extra HBM pass on y).
    avg = jnp.mean(y.astype(jnp.float32), axis=(2, 3))               # (N, C)
    hca = _leaky(avg @ params["ca_w1"].T + params["ca_b1"])          # (N, C//8)
    ca = jax.nn.sigmoid(hca @ params["ca_w2"].T + params["ca_b2"])   # (N, C)
    ca = ca[:, :, None].astype(x.dtype)                              # (N, C, 1)

    # NCHW-native flattening: (N, C, H, W) -> (N, C, H*W) is a free reshape;
    # HW is the lane-dense last axis.
    y3 = y.reshape(n, c, hw)
    x3 = x.reshape(n, c, hw)

    # Pad HW to a multiple of 128 (once) so stores stay unmasked / lane-dense;
    # padded columns are zeros and are sliced off after the kernel.
    hw_pad = -(-hw // 128) * 128
    if hw_pad != hw:
        pad = hw_pad - hw
        y3 = jnp.pad(y3, ((0, 0), (0, 0), (0, pad)))
        x3 = jnp.pad(x3, ((0, 0), (0, 0), (0, pad)))

    budget, vmem_limit = _vmem_config()
    tile_hw = _pick_tile_hw(hw_pad, n, c, jnp.dtype(x.dtype).itemsize,
                            budget, tile_hw_cap)

    # Fused CALayer-apply + PALayer + residual add (single HBM pass).
    out3 = _fused_ca_pa_residual(
        y3, x3, ca,
        params["pa_w1"].astype(x.dtype),                             # (C//8, C)
        params["pa_b1"].reshape(c8, 1).astype(jnp.float32),          # (C//8, 1)
        params["pa_w2"].reshape(c8, 1).astype(jnp.float32),          # (C//8, 1)
        params["pa_b2"].reshape(1, 1).astype(jnp.float32),           # (1, 1)
        tile_hw, vmem_limit)

    if hw_pad != hw:
        out3 = out3[:, :, :hw]
    return out3.reshape(n, c, h, w)


def _reference(x, params):
    # Pure-JAX reference of the PyTorch CP_Attention_block forward.
    res = _leaky(_conv2d_nchw(x, params["conv1_w"], params["conv1_b"])) + x
    y = _conv2d_nchw(res, params["conv2_w"], params["conv2_b"])
    # CALayer
    avg = jnp.mean(y, axis=(2, 3))                                   # (N, C)
    hca = _leaky(avg @ params["ca_w1"].T + params["ca_b1"])
    cav = jax.nn.sigmoid(hca @ params["ca_w2"].T + params["ca_b2"])  # (N, C)
    t = y * cav[:, :, None, None]
    # PALayer
    hp = _leaky(jnp.einsum("dc,nchw->ndhw", params["pa_w1"], t)
                + params["pa_b1"][None, :, None, None])
    a = jax.nn.sigmoid(jnp.einsum("od,ndhw->nohw", params["pa_w2"], hp)
                       + params["pa_b2"][None, :, None, None])       # (N, 1, H, W)
    return t * a + x


if __name__ == "__main__":
    key = jax.random.PRNGKey(0)
    ks = jax.random.split(key, 14)

    # Small shapes consistent with the module (dim must be >= 8 for dim // 8).
    N, C, H, W = 2, 32, 16, 16
    C8 = C // 8
    K = 3  # conv kernel_size with 'same' padding

    x = jax.random.normal(ks[0], (N, C, H, W), dtype=jnp.float32)

    params = {
        # conv(dim, dim, kernel_size, bias=True), PyTorch OIHW layout.
        "conv1_w": jax.random.normal(ks[1], (C, C, K, K), jnp.float32) * 0.05,
        "conv1_b": jax.random.normal(ks[2], (C,), jnp.float32) * 0.05,
        "conv2_w": jax.random.normal(ks[3], (C, C, K, K), jnp.float32) * 0.05,
        "conv2_b": jax.random.normal(ks[4], (C,), jnp.float32) * 0.05,
        # CALayer 1x1 convs (weights squeezed to matmul form).
        "ca_w1": jax.random.normal(ks[5], (C8, C), jnp.float32) * 0.1,
        "ca_b1": jax.random.normal(ks[6], (C8,), jnp.float32) * 0.1,
        "ca_w2": jax.random.normal(ks[7], (C, C8), jnp.float32) * 0.1,
        "ca_b2": jax.random.normal(ks[8], (C,), jnp.float32) * 0.1,
        # PALayer 1x1 convs.
        "pa_w1": jax.random.normal(ks[9], (C8, C), jnp.float32) * 0.1,
        "pa_b1": jax.random.normal(ks[10], (C8,), jnp.float32) * 0.1,
        "pa_w2": jax.random.normal(ks[11], (1, C8), jnp.float32) * 0.1,
        "pa_b2": jax.random.normal(ks[12], (1,), jnp.float32) * 0.1,
    }

    ref = _reference(x, params)

    # Default (budget-sized tile) configuration.
    out = jax.block_until_ready(cp_attention_block_forward(x, params))
    assert out.shape == x.shape
    assert jnp.allclose(out, ref, atol=1e-4, rtol=1e-4)

    # Small tile cap -> multi-block HW grid (exercises the tiled index maps).
    out_small = jax.block_until_ready(
        cp_attention_block_forward(x, params, tile_hw_cap=128))
    assert jnp.allclose(out_small, ref, atol=1e-4, rtol=1e-4)

    # Non-128-multiple spatial size -> exercises the HW padding path.
    x_odd = jax.random.normal(ks[13], (N, C, 10, 10), dtype=jnp.float32)
    ref_odd = _reference(x_odd, params)
    out_odd = jax.block_until_ready(cp_attention_block_forward(x_odd, params))
    assert out_odd.shape == x_odd.shape
    assert jnp.allclose(out_odd, ref_odd, atol=1e-4, rtol=1e-4)

    print("KERNEL_OK")
</pallas_src>

<mosaic_0001>
module attributes {stable_mosaic.version = 11 : i64} {
  func.func @_fused_ca_pa_kernel(%arg0: i32, %arg1: i32, %arg2: memref<1x32x256xf32, #tpu.memory_space<vmem>>, %arg3: memref<1x32x256xf32, #tpu.memory_space<vmem>>, %arg4: memref<1x32x1xf32, #tpu.memory_space<vmem>>, %arg5: memref<4x32xf32, #tpu.memory_space<vmem>>, %arg6: memref<4x1xf32, #tpu.memory_space<vmem>>, %arg7: memref<4x1xf32, #tpu.memory_space<vmem>>, %arg8: memref<1x1xf32, #tpu.memory_space<vmem>>, %arg9: memref<1x32x256xf32, #tpu.memory_space<vmem>>) attributes {dimension_semantics = [#tpu.dimension_semantics<parallel>, #tpu.dimension_semantics<parallel>], iteration_bounds = array<i64: 2, 1>, scalar_prefetch = 0 : i64, scratch_operands = 0 : i64, tpu.core_type = #tpu.core_type<tc>, window_params = [{transform_indices = @transform_0, window_bounds = array<i64: 1, 32, 256>}, {transform_indices = @transform_1, window_bounds = array<i64: 1, 32, 256>}, {transform_indices = @transform_2, window_bounds = array<i64: 1, 32, 1>}, {pipeline_mode = #tpu.pipeline_mode<synchronous>, transform_indices = @transform_3, window_bounds = array<i64: 4, 32>}, {pipeline_mode = #tpu.pipeline_mode<synchronous>, transform_indices = @transform_4, window_bounds = array<i64: 4, 1>}, {pipeline_mode = #tpu.pipeline_mode<synchronous>, transform_indices = @transform_5, window_bounds = array<i64: 4, 1>}, {pipeline_mode = #tpu.pipeline_mode<synchronous>, transform_indices = @transform_6, window_bounds = array<i64: 1, 1>}, {transform_indices = @transform_7, window_bounds = array<i64: 1, 32, 256>}]} {
    %c0 = arith.constant 0 : index
    %c0_0 = arith.constant 0 : index
    %c0_1 = arith.constant 0 : index
    %0 = vector.load %arg2[%c0, %c0_0, %c0_1] : memref<1x32x256xf32, #tpu.memory_space<vmem>>, vector<1x32x256xf32>
    %1 = vector.shape_cast %0 : vector<1x32x256xf32> to vector<32x256xf32>
    %c0_2 = arith.constant 0 : index
    %c0_3 = arith.constant 0 : index
    %c0_4 = arith.constant 0 : index
    %2 = vector.load %arg4[%c0_2, %c0_3, %c0_4] : memref<1x32x1xf32, #tpu.memory_space<vmem>>, vector<1x32x1xf32>
    %3 = vector.shape_cast %2 : vector<1x32x1xf32> to vector<32x1xf32>
    %4 = vector.broadcast %3 : vector<32x1xf32> to vector<32x256xf32>
    %5 = arith.mulf %1, %4 : vector<32x256xf32>
    %c0_5 = arith.constant 0 : index
    %c0_6 = arith.constant 0 : index
    %6 = vector.load %arg5[%c0_5, %c0_6] : memref<4x32xf32, #tpu.memory_space<vmem>>, vector<4x32xf32>
    %cst = arith.constant dense<0.000000e+00> : vector<4x256xf32>
    %7 = tpu.matmul %6, %5, %cst {dimension_numbers = #tpu.dot_dimension_numbers<[1], [0], [0], [1], [0, 0, 1, 1], [], []>} : vector<4x32xf32>, vector<32x256xf32>, vector<4x256xf32> -> vector<4x256xf32>
    %c0_7 = arith.constant 0 : index
    %c0_8 = arith.constant 0 : index
    %8 = vector.load %arg6[%c0_7, %c0_8] : memref<4x1xf32, #tpu.memory_space<vmem>>, vector<4x1xf32>
    %9 = vector.broadcast %8 : vector<4x1xf32> to vector<4x256xf32>
    %10 = arith.addf %7, %9 : vector<4x256xf32>
    %cst_9 = arith.constant 2.000000e-01 : f32
    %11 = vector.broadcast %cst_9 : f32 to vector<4x256xf32>
    %12 = arith.mulf %11, %10 : vector<4x256xf32>
    %13 = arith.maximumf %10, %12 : vector<4x256xf32>
    %c0_10 = arith.constant 0 : index
    %c0_11 = arith.constant 0 : index
    %14 = vector.load %arg7[%c0_10, %c0_11] : memref<4x1xf32, #tpu.memory_space<vmem>>, vector<4x1xf32>
    %15 = vector.broadcast %14 : vector<4x1xf32> to vector<4x256xf32>
    %16 = arith.mulf %13, %15 : vector<4x256xf32>
    %cst_12 = arith.constant dense<0.000000e+00> : vector<256xf32>
    %17 = vector.multi_reduction <add>, %16, %cst_12 [0] : vector<4x256xf32> to vector<256xf32>
    %18 = vector.shape_cast %17 : vector<256xf32> to vector<1x256xf32>
    %c0_13 = arith.constant 0 : index
    %c0_14 = arith.constant 0 : index
    %19 = vector.load %arg8[%c0_13, %c0_14] : memref<1x1xf32, #tpu.memory_space<vmem>>, vector<1x1xf32>
    %20 = vector.broadcast %19 : vector<1x1xf32> to vector<1x256xf32>
    %21 = arith.addf %18, %20 : vector<1x256xf32>
    %22 = arith.negf %21 : vector<1x256xf32>
    %23 = math.exp %22 : vector<1x256xf32>
    %cst_15 = arith.constant 1.000000e+00 : f32
    %24 = vector.broadcast %cst_15 : f32 to vector<1x256xf32>
    %25 = arith.addf %24, %23 : vector<1x256xf32>
    %26 = arith.divf %24, %25 : vector<1x256xf32>
    %27 = vector.broadcast %26 : vector<1x256xf32> to vector<32x256xf32>
    %28 = arith.mulf %5, %27 : vector<32x256xf32>
    %c0_16 = arith.constant 0 : index
    %c0_17 = arith.constant 0 : index
    %c0_18 = arith.constant 0 : index
    %29 = vector.load %arg3[%c0_16, %c0_17, %c0_18] : memref<1x32x256xf32, #tpu.memory_space<vmem>>, vector<1x32x256xf32>
    %30 = vector.shape_cast %29 : vector<1x32x256xf32> to vector<32x256xf32>
    %31 = arith.addf %28, %30 : vector<32x256xf32>
    %c0_19 = arith.constant 0 : index
    %c0_20 = arith.constant 0 : index
    %c0_21 = arith.constant 0 : index
    %32 = vector.load %arg9[%c0_19, %c0_20, %c0_21] : memref<1x32x256xf32, #tpu.memory_space<vmem>>, vector<1x32x256xf32>
    %33 = vector.shape_cast %32 : vector<1x32x256xf32> to vector<32x256xf32>
    %34 = vector.shape_cast %31 : vector<32x256xf32> to vector<1x32x256xf32>
    tpu.vector_store %arg9[%c0_19, %c0_20, %c0_21], %34 {strides = array<i32>} : memref<1x32x256xf32, #tpu.memory_space<vmem>>, vector<1x32x256xf32>,
    return
  }
  func.func @transform_0(%arg0: i32, %arg1: i32) -> (i32, i32, i32) {
    %c0_i32 = arith.constant 0 : i32
    %c0_i32_0 = arith.constant 0 : i32
    return %arg0, %c0_i32, %arg1 : i32, i32, i32
  }
  func.func @transform_1(%arg0: i32, %arg1: i32) -> (i32, i32, i32) {
    %c0_i32 = arith.constant 0 : i32
    %c0_i32_0 = arith.constant 0 : i32
    return %arg0, %c0_i32, %arg1 : i32, i32, i32
  }
  func.func @transform_2(%arg0: i32, %arg1: i32) -> (i32, i32, i32) {
    %c0_i32 = arith.constant 0 : i32
    %c0_i32_0 = arith.constant 0 : i32
    %c0_i32_1 = arith.constant 0 : i32
    return %arg0, %c0_i32, %c0_i32_0 : i32, i32, i32
  }
  func.func @transform_3(%arg0: i32, %arg1: i32) -> (i32, i32) {
    %c0_i32 = arith.constant 0 : i32
    %c0_i32_0 = arith.constant 0 : i32
    %c0_i32_1 = arith.constant 0 : i32
    return %c0_i32, %c0_i32_0 : i32, i32
  }
  func.func @transform_4(%arg0: i32, %arg1: i32) -> (i32, i32) {
    %c0_i32 = arith.constant 0 : i32
    %c0_i32_0 = arith.constant 0 : i32
    %c0_i32_1 = arith.constant 0 : i32
    return %c0_i32, %c0_i32_0 : i32, i32
  }
  func.func @transform_5(%arg0: i32, %arg1: i32) -> (i32, i32) {
    %c0_i32 = arith.constant 0 : i32
    %c0_i32_0 = arith.constant 0 : i32
    %c0_i32_1 = arith.constant 0 : i32
    return %c0_i32, %c0_i32_0 : i32, i32
  }
  func.func @transform_6(%arg0: i32, %arg1: i32) -> (i32, i32) {
    %c0_i32 = arith.constant 0 : i32
    %c0_i32_0 = arith.constant 0 : i32
    %c0_i32_1 = arith.constant 0 : i32
    return %c0_i32, %c0_i32_0 : i32, i32
  }
  func.func @transform_7(%arg0: i32, %arg1: i32) -> (i32, i32, i32) {
    %c0_i32 = arith.constant 0 : i32
    %c0_i32_0 = arith.constant 0 : i32
    return %arg0, %c0_i32, %arg1 : i32, i32, i32
  }
}

</mosaic_0001>

<bundles_post_ra>
// kernel: cp_attention_block_forward.1
= control target key start
LH: loop header
LB: loop body
LE: loop exit
PB: predicated region body
PF: predicated region fallthrough
CT: control target
= control target key end

     0   :  { %s833_s26 = smov 0   ;;  %s835_s27 = smov 0   ;;  %s918_s0 = inlined_call_operand.vmem [shape: f32[2,32,256], index: 0, kind: input, shape index: {}]   ;;  %s919_s1 = inlined_call_operand.vmem [shape: f32[2,32,256], index: 1, kind: input, shape index: {}]   ;;  %s920_s2 = inlined_call_operand.vmem [shape: f32[2,32,1], index: 2, kind: input, shape index: {}]   ;;  %s921_s3 = inlined_call_operand.vmem [shape: f32[4,32], index: 3, kind: input, shape index: {}]   ;;  %s922_s4 = inlined_call_operand.vmem [shape: f32[4,1], index: 4, kind: input, shape index: {}]   ;;  %s923_s5 = inlined_call_operand.vmem [shape: f32[4,1], index: 5, kind: input, shape index: {}]   ;;  %s924_s6 = inlined_call_operand.<no memory space> [shape: f32[1,1], index: 6, kind: input, shape index: {}]   ;;  %s925_s7 = inlined_call_operand.vmem [shape: f32[2,32,256], index: 7, kind: output, shape index: {}]  }
   0x1   :  { %v12_v0 = vstv %s924_s6  ;;  %s837_s28 = smov 0  }
   0x2   :  { %13 = vst [vmem:[#allocation2] sm:$0x1] %v12_v0 }
   0x3 LB: > { %s31_s6 = sadd.s32 1, %s782_s27  ;;  %p702_p0 = scmp.ge.s32.totalorder %s786_s28, 1  ;;  %s786_s28 = sphi %s837_s28, %s19_s28   ;;  %s782_s27 = sphi %s835_s27, %s927_s27   ;;  %s778_s26 = sphi %s833_s26, %s926_s26  }
   0x4   : > { %p33_p1 = scmp.ge.s32.totalorder %s31_s6, 2  ;;  %p287_p2 = scmp.lt.s32.totalorder %s786_s28, 3 }
   0x6   : > { %s929_s6 = smov (%p33_p1, %s31_s6), 0  ;;  %p288_p3 = pnand %p702_p0, %p287_p2 }
   0x7   : > { %p342_p4 = scmp.lt.s32.totalorder (!%p288_p3), %s778_s26, 1  ;;  %v788_v1 = vmov (!%p288_p3), 0   ;;  %v502_v6 = vld [vmem:[%s923_s5] sm:$0xf] (!%p288_p3)  ;;  %v789_v9 = vmov (!%p288_p3), 0.0   ;;  %vm423_vm0 = vcmask (!%p288_p3), 261120   ;;  %v531_v46 = vlaneseq (!%p288_p3) }
   0x8   : > { %291 = sbr.rel (%p288_p3) target bundleno = 432 (0x1b0), region = 48  ;;  %755 = vset.pattern.permute.xlu1 (!%p288_p3), %v788_v1  ;;  %754 = vset.pattern.permute.xlu0 (!%p288_p3), %v788_v1  ;;  %v417_v7 = vld [vmem:[%s922_s4] sm:$0xf] (!%p288_p3)  ;;  %vm510_vm1 = vcmask (!%p288_p3), 1043456  }
   0x9   : > { %v525_v8 = vld [vmem:[#allocation2] sm:$0x1] (!%p288_p3)  ;;  %491 = vmatprep.mubr.f32.mxu0 (!%p288_p3), %v789_v9  ;;  %v532_v52 = vshrl.u32 (!%p288_p3), %v531_v46, 7 }
   0xa   : > { %v416_v34 = vld [vmem:[%s921_s3] sm:$0xf] (!%p288_p3) }
   0xb   : > { %v533_v57 = vsub.s32 (!%p288_p3), 0, %v532_v52 }
   0xf   : > { %s931_s26 = smov (!%p342_p4, %s778_s26), 1 }
  0x10   : > { %s718_s29 = sshll.u32 %s931_s26, 5  ;;  %s860_s14 = sshll.u32 %s931_s26, 6 }
  0x11   : > { %s365_s9 = scalar_lea.vmem %s920_s2, %s718_s29  ;;  %s349_s17 = scalar_lea.vmem %s918_s0, %s860_s14 }
  0x12   : > { %v386_v2 = vld [vmem:[%s365_s9 + $0x10] sm:$0xff]  ;;  %v384_v3 = vld [vmem:[%s365_s9] sm:$0xff]  ;;  %v387_v4 = vld [vmem:[%s365_s9 + $0x18] sm:$0xff]  ;;  %s359_s22 = scalar_lea.vmem %s919_s1, %s860_s14  ;;  %s374_s25 = scalar_lea.vmem %s925_s7, %s860_s14 }
  0x13   : > { %400 = vperm.xlu1 %755, %v386_v2   ;;  %390 = vperm.xlu0 %754, %v384_v3   ;;  %v385_v5 = vld [vmem:[%s365_s9 + $0x8] sm:$0xff]  ;;  %v376_v13 = vld [vmem:[%s349_s17] sm:$0xff]  ;;  %v383_v15 = vld [vmem:[%s349_s17 + $0x38] sm:$0xff] }
  0x14   : > { %v381_v12 = vld [vmem:[%s349_s17 + $0x28] sm:$0xff]  ;;  %v378_v16 = vld [vmem:[%s349_s17 + $0x10] sm:$0xff]  ;;  %v379_v17 = vld [vmem:[%s349_s17 + $0x18] sm:$0xff] }
  0x15   : > { %v377_v14 = vld [vmem:[%s349_s17 + $0x8] sm:$0xff]  ;;  %v380_v22 = vld [vmem:[%s349_s17 + $0x20] sm:$0xff]  ;;  %v382_v24 = vld [vmem:[%s349_s17 + $0x30] sm:$0xff] }
  0x17   : > { %405 = vperm.xlu1 %755, %v387_v4   ;;  %395 = vperm.xlu0 %754, %v385_v5  }
  0x1b   : > { %505 = vperm.xlu1 %755, %v502_v6   ;;  %420 = vperm.xlu0 %754, %v417_v7  }
  0x1f   : > { %528 = vperm.xlu0 %754, %v525_v8  }
  0x92   : > { %v401_v10 = vpop.permute.xlu1 %400  ;;  %v391_v11 = vpop.permute.xlu0 %390 }
  0x93   : > { %v866_v18 = vmul.f32 %v401_v10, %v381_v12  ;;  %v868_v19 = vmul.f32 %v391_v11, %v376_v13  ;;  %v870_v23 = vmul.f32 %v391_v11, %v377_v14  ;;  %v882_v30 = vmul.f32 %v401_v10, %v380_v22  ;;  %v557_v10 = vld [vmem:[%s359_s22] sm:$0xff]  ;;  %v558_v11 = vld [vmem:[%s359_s22 + $0x8] sm:$0xff]  ;;  %v559_v13 = vld [vmem:[%s359_s22 + $0x10] sm:$0xff] }
  0x94   : > { %v561_v14 = vld [vmem:[%s359_s22 + $0x20] sm:$0xff] }
  0x96   : > { %v406_v20 = vpop.permute.xlu1 %405  ;;  %v396_v21 = vpop.permute.xlu0 %395 }
  0x97   : > { %v872_v25 = vmul.f32 %v406_v20, %v383_v15  ;;  %v874_v26 = vmul.f32 %v396_v21, %v378_v16  ;;  %v876_v27 = vmul.f32 %v396_v21, %v379_v17  ;;  %v884_v31 = vmul.f32 %v406_v20, %v382_v24  ;;  %v563_v15 = vld [vmem:[%s359_s22 + $0x30] sm:$0xff]  ;;  %v560_v17 = vld [vmem:[%s359_s22 + $0x18] sm:$0xff]  ;;  %v562_v20 = vld [vmem:[%s359_s22 + $0x28] sm:$0xff] }
  0x98   : > { %v564_v21 = vld [vmem:[%s359_s22 + $0x38] sm:$0xff] }
  0x99   : > { %v720_v28 = vpack.c.bf16 %v876_v27, %v870_v23  ;;  %v722_v29 = vpack.c.bf16 %v874_v26, %v868_v19  ;;  %v724_v32 = vpack.c.bf16 %v872_v25, %v866_v18  ;;  %v726_v33 = vpack.c.bf16 %v884_v31, %v882_v30 }
  0x9a   : > { %v421_v35 = vpop.permute.xlu0 %420  ;;  %v506_v43 = vpop.permute.xlu1 %505 }
  0x9b   : > { %721 = vmatprep.subr.bf16.mxu0 %v720_v28 }
  0x9c   : > { %723 = vmatpush1.bf16.msra.mxu0 %v722_v29 }
  0x9d   : > { %725 = vmatprep.subr.bf16.mxu0 %v724_v32 }
  0x9e   : > { %v529_v59 = vpop.permute.xlu0 %528 }
  0x9f   : > { %v534_v63 = vrot.slane %v529_v59, %v533_v57 }
  0xa0   : > { %727 = vmatpush1.bf16.msra.mxu0 %v726_v33 }
  0xa3   : > { %711 = vmatmul.mubr.msk.f32.vlgmr.msra.gmra.mrb[0].mxu0 %vm423_vm0, %v416_v34 }
 0x176   : > { %v493_v36 = vpop.f32.mrb[0].mxu0 }
 0x177   : > { %v494_v37 = vadd.f32 %v493_v36, %v421_v35  ;;  %v495_v38 = vpop.f32.mrb[1].mxu0 }
 0x178   : > { %v496_v39 = vadd.f32 %v495_v38, %v421_v35 }
 0x179   : > { %v498_v40 = vmul.f32 0.2, %v494_v37 }
 0x17a   : > { %v499_v41 = vmul.f32 0.2, %v496_v39 }
 0x17b   : > { %v500_v42 = vmax.f32 %v494_v37, %v498_v40 }
 0x17c   : > { %v501_v44 = vmax.f32 %v496_v39, %v499_v41 }
 0x17d   : > { %v508_v45 = vmul.f32 %v506_v43, %v500_v42 }
 0x17e   : > { %v509_v47 = vmul.f32 %v506_v43, %v501_v44 }
 0x17f   : > { %v511_v48 = vsel %vm510_vm1, %v508_v45, 0.0 }
 0x180   : > { %v512_v49 = vrot.slane %v511_v48, 4  ;;  %v518_v50 = vsel %vm510_vm1, %v509_v47, 0.0 }
 0x181   : > { %v519_v51 = vrot.slane %v518_v50, 4 }
 0x182   : > { %v513_v53 = vadd.f32 %v512_v49, %v511_v48 }
 0x183   : > { %v520_v54 = vadd.f32 %v519_v51, %v518_v50 }
 0x184   : > { %v514_v55 = vrot.slane %v513_v53, 2 }
 0x185   : > { %v521_v56 = vrot.slane %v520_v54, 2 }
 0x186   : > { %v515_v58 = vadd.f32 %v514_v55, %v513_v53 }
 0x187   : > { %v522_v60 = vadd.f32 %v521_v56, %v520_v54 }
 0x188   : > { %v516_v61 = vrot.slane %v515_v58, 1 }
 0x189   : > { %v523_v62 = vrot.slane %v522_v60, 1 }
 0x18a   : > { %v517_v0 = vadd.f32 %v516_v61, %v515_v58 }
 0x18b   : > { %v524_v1 = vadd.f32 %v523_v62, %v522_v60 }
 0x18c   : > { %v535_v2 = vadd.f32 %v534_v63, %v517_v0 }
 0x18d   : > { %v536_v3 = vadd.f32 %v534_v63, %v524_v1 }
 0x18e   : > { %v712_v4 = vmul.f32 -1.442695, %v535_v2 }
 0x18f   : > { %v713_v5 = vmul.f32 -1.442695, %v536_v3 }
 0x190   : > { %756 = vpow2.f32 %v712_v4 }
 0x191   : > { %758 = vpow2.f32 %v713_v5 }
 0x19a   : > { %v757_v6 = vpop.eup %756 }
 0x19b   : > { %v759_v7 = vpop.eup %758  ;;  %v543_v8 = vadd.f32 1.0, %v757_v6 }
 0x19c   : > { %v544_v9 = vadd.f32 1.0, %v759_v7 }
 0x19d   : > { %760 = vrcp.f32 %v543_v8 }
 0x19e   : > { %762 = vrcp.f32 %v544_v9 }
 0x1a7   : > { %v761_v12 = vpop.eup %760 }
 0x1a8   : > { %v763_v16 = vpop.eup %762  ;;  %v549_v22 = vmul.f32 %v761_v12, %v868_v19  ;;  %v551_v24 = vmul.f32 %v761_v12, %v874_v26  ;;  %v553_v28 = vmul.f32 %v761_v12, %v882_v30  ;;  %v555_v29 = vmul.f32 %v761_v12, %v884_v31 }
 0x1a9   : > { %v550_v32 = vmul.f32 %v763_v16, %v870_v23  ;;  %v552_v33 = vmul.f32 %v763_v16, %v876_v27  ;;  %v554_v34 = vmul.f32 %v763_v16, %v866_v18  ;;  %v556_v35 = vmul.f32 %v763_v16, %v872_v25 }
 0x1aa   : > { %v565_v36 = vadd.f32 %v557_v10, %v549_v22  ;;  %v567_v19 = vadd.f32 %v559_v13, %v551_v24  ;;  %v569_v37 = vadd.f32 %v561_v14, %v553_v28  ;;  %v571_v26 = vadd.f32 %v563_v15, %v555_v29 }
 0x1ab   : > { %v566_v38 = vadd.f32 %v558_v11, %v550_v32  ;;  %v568_v30 = vadd.f32 %v560_v17, %v552_v33  ;;  %v570_v39 = vadd.f32 %v562_v20, %v554_v34  ;;  %v572_v31 = vadd.f32 %v564_v21, %v556_v35 }
 0x1ac   : > { %573 = vst [vmem:[%s374_s25] sm:$0xff] %v565_v36  ;;  %575 = vst [vmem:[%s374_s25 + $0x10] sm:$0xff] %v567_v19 }
 0x1ad   : > { %577 = vst [vmem:[%s374_s25 + $0x20] sm:$0xff] %v569_v37  ;;  %579 = vst [vmem:[%s374_s25 + $0x30] sm:$0xff] %v571_v26 }
 0x1ae   : > { %574 = vst [vmem:[%s374_s25 + $0x8] sm:$0xff] %v566_v38  ;;  %576 = vst [vmem:[%s374_s25 + $0x18] sm:$0xff] %v568_v30 }
 0x1af   : > { %578 = vst [vmem:[%s374_s25 + $0x28] sm:$0xff] %v570_v39  ;;  %580 = vst [vmem:[%s374_s25 + $0x38] sm:$0xff] %v572_v31 }
 0x1b0 PF: > { %s19_s28 = sadd.s32 1, %s786_s28   ;;  %s926_s26 = smov %s782_s27 }
 0x1b1   : > { %p16_p5 = scmp.ge.s32.totalorder %s19_s28, 4   ;;  %s927_s27 = smov %s929_s6 }
 0x1b3   :  { %18 = sbr.rel (!%p16_p5) target bundleno = 3 (0x3), region = 84 }

</bundles_post_ra>
